<compile_context>
chip_gen: v7x
topology: tpu7x:2x2x1
jax: 0.10.0
libtpu: 0.0.40
codegen_flags: <defaults>
</compile_context>

<pallas_src>
import jax
import jax.numpy as jnp
from jax.experimental import pallas as pl
from jax.experimental.pallas import tpu as pltpu

LANE = 128     # TPU lane width; all layer outputs are padded to a multiple of this
SUBLANE = 8    # TPU sublane width; batch blocks are padded to a multiple of this


def _round_up(x, m):
    return ((x + m - 1) // m) * m


# ----------------------------------------------------------------------------
# Synthetic "args" + estimator packages (the PyTorch code torch.load()s these;
# here they are initialized deterministically in-script).
# ----------------------------------------------------------------------------
class Args:
    gmin = 1e-3
    gmax = 1e-1
    # TanhRT nonlinear-circuit parameters (pre-sigmoid, normalized)
    ACT_R1n, ACT_R2n, ACT_W1n, ACT_L1n, ACT_W2n, ACT_L2n = 0.1, 0.2, 0.3, 0.4, 0.5, 0.6
    # InvRT nonlinear-circuit parameters
    NEG_R1n, NEG_k1, NEG_R3n, NEG_k2, NEG_R5n, NEG_Wn, NEG_Ln = 0.1, 0.2, 0.3, 0.4, 0.5, 0.6, 0.7


# TODO(synk): the real eta_estimator / power_estimator architectures live in
# torch.load('./utils/*_model_package'); a deterministic 2-layer MLP
# (tanh hidden, sigmoid output) is synthesized here instead.
def init_mlp(key, dims):
    params = []
    for din, dout in zip(dims[:-1], dims[1:]):
        key, k1, k2 = jax.random.split(key, 3)
        W = jax.random.normal(k1, (din, dout), jnp.float32) / jnp.sqrt(float(din))
        b = 0.01 * jax.random.normal(k2, (dout,), jnp.float32)
        params.append((W, b))
    return params


def mlp_apply(params, x):
    h = x
    for i, (W, b) in enumerate(params):
        h = h @ W + b
        if i < len(params) - 1:
            h = jnp.tanh(h)
    return jax.nn.sigmoid(h)


def tanh_rt_eta(args, pkg):
    """TanhRT.eta -> (4,) [ea0, ea1, ea2, ea3]."""
    rt_ = jnp.array([args.ACT_R1n, args.ACT_R2n, args.ACT_W1n,
                     args.ACT_L1n, args.ACT_W2n, args.ACT_L2n], jnp.float32)
    rt_temp = jax.nn.sigmoid(rt_)
    RTn = jnp.zeros(9, jnp.float32).at[:6].set(rt_temp)
    RT = RTn * (pkg["X_max"] - pkg["X_min"]) + pkg["X_min"]
    R1, R2, W1, L1, W2, L2 = [RT[i] for i in range(6)]
    RT_ext = jnp.stack([R1, R2, W1, L1, W2, L2, R2 / R1, L1 / W1, L2 / W2])
    RTn_ext = (RT_ext - pkg["X_min"]) / (pkg["X_max"] - pkg["X_min"])
    eta_n = mlp_apply(pkg["est"], RTn_ext)
    return eta_n * (pkg["Y_max"] - pkg["Y_min"]) + pkg["Y_min"]


def inv_rt_eta(args, pkg):
    """InvRT.eta -> (4,) [ei0, ei1, ei2, ei3]."""
    rt_ = jnp.array([args.NEG_R1n, args.NEG_k1, args.NEG_R3n, args.NEG_k2,
                     args.NEG_R5n, args.NEG_Wn, args.NEG_Ln], jnp.float32)
    rt_temp = jax.nn.sigmoid(rt_)
    RTn = jnp.zeros(10, jnp.float32)
    for src, dst in zip([0, 2, 4, 5, 6], [0, 2, 4, 5, 6]):
        RTn = RTn.at[dst].set(rt_temp[src])
    RT = RTn * (pkg["X_max"] - pkg["X_min"]) + pkg["X_min"]
    R2 = RT[0] * rt_temp[1]
    R4 = RT[2] * rt_temp[3]
    RT_full = jnp.stack([RT[0], R2, RT[2], R4, RT[4], RT[5], RT[6]])  # (7,)
    padded = jnp.zeros(10, jnp.float32).at[:7].set(RT_full)
    padded = jnp.where(padded > pkg["X_max"], pkg["X_max"], padded)
    padded = jnp.where(padded < pkg["X_min"], pkg["X_min"], padded)
    R1, R2, R3, R4, R5, W, L = [padded[i] for i in range(7)]
    RT_ext = jnp.stack([R1, R2, R3, R4, R5, W, L, R2 / R1, R4 / R3, L / W])
    RTn_ext = (RT_ext - pkg["X_min"]) / (pkg["X_max"] - pkg["X_min"])
    eta_n = mlp_apply(pkg["est"], RTn_ext)
    return eta_n * (pkg["Y_max"] - pkg["Y_min"]) + pkg["Y_min"]


# ----------------------------------------------------------------------------
# pLayer parameter construction / preprocessing (glue, plain JAX)
# ----------------------------------------------------------------------------
def init_theta(key, n_in, n_out, args, eta_act2):
    theta = jax.random.uniform(key, (n_in + 2, n_out), jnp.float32) / 100.0 + args.gmin
    theta = theta.at[-1, :].add(args.gmax)
    theta = theta.at[-2, :].set(
        eta_act2 / (1.0 - eta_act2) * (jnp.sum(theta[:-2, :], axis=0) + theta[-1, :]))
    return theta


def layer_weights(theta, args):
    t = jnp.clip(theta, -args.gmax, args.gmax)
    t = jnp.where(jnp.abs(t) < args.gmin, 0.0, t)
    denom = jnp.sum(jnp.abs(t), axis=0, keepdims=True)
    # Guard: a fully gmin-zeroed column would otherwise produce NaN weights.
    denom = jnp.where(denom == 0.0, 1.0, denom)
    W = jnp.abs(t) / denom
    pos = (t >= 0.0).astype(jnp.float32)
    neg = 1.0 - pos
    return W * pos, W * neg


def fold_layer_split(wp, wn, eta_inv, pad_rows_to=None, pad_cols_to=None):
    """Fold the [a, 1, 0] extension into a bias row; return split weights.

      a_ext @ Wp + a_neg @ Wn
        == a @ Wp[:-2] + InvRT(a) @ Wn[:-2] + (Wp[-2, :] + InvRT(1.0) * Wn[-2, :])

    `pad_rows_to` zero-pads the input-row dimension (so padded lanes of the
    previous layer's activation multiply by exactly zero); `pad_cols_to`
    zero-pads the output columns (lane-dense tiles everywhere).
    """
    ei0, ei1, ei2, ei3 = eta_inv[0], eta_inv[1], eta_inv[2], eta_inv[3]
    inv_one = -(ei0 + ei1 * jnp.tanh((1.0 - ei2) * ei3))
    w_top = wp[:-2, :]                                    # rows hit by `a`
    w_bot = wn[:-2, :]                                    # rows hit by `InvRT(a)`
    bias = (wp[-2, :] + inv_one * wn[-2, :])[None, :]     # (1, n_out)
    n_in, n_out = w_top.shape
    if pad_rows_to is not None and pad_rows_to > n_in:
        pr = pad_rows_to - n_in
        w_top = jnp.pad(w_top, ((0, pr), (0, 0)))
        w_bot = jnp.pad(w_bot, ((0, pr), (0, 0)))
    if pad_cols_to is not None and pad_cols_to > n_out:
        pc = pad_cols_to - n_out
        w_top = jnp.pad(w_top, ((0, 0), (0, pc)))
        w_bot = jnp.pad(w_bot, ((0, 0), (0, pc)))
        bias = jnp.pad(bias, ((0, 0), (0, pc)))
    return w_top, w_bot, bias


# ----------------------------------------------------------------------------
# Pallas kernel: the FULL pNN forward (all pLayers fused in one call)
# ----------------------------------------------------------------------------
def make_pnn_kernel(num_layers, mxu_dtype=jnp.float32):
    def kernel(*refs):
        eta_ref = refs[0]          # SMEM (8,): [ei0..ei3, ea0..ea3]
        x_ref = refs[1]            # (TB, d0) input activations
        o_ref = refs[-1]           # (TB, n_pad) lane-dense padded output
        wb_refs = refs[2:-1]       # (w_top0, w_bot0, b0, w_top1, w_bot1, b1, ...)

        ei0, ei1, ei2, ei3 = eta_ref[0], eta_ref[1], eta_ref[2], eta_ref[3]
        ea0, ea1, ea2, ea3 = eta_ref[4], eta_ref[5], eta_ref[6], eta_ref[7]

        def inv(v):                # InvRT nonlinearity (EUP tanh, f32)
            return -(ei0 + ei1 * jnp.tanh((v - ei2) * ei3))

        def act(v):                # TanhRT nonlinearity (EUP tanh, f32)
            return ea0 + ea1 * jnp.tanh((v - ea2) * ea3)

        a = x_ref[...]
        for l in range(num_layers):
            w_top = wb_refs[3 * l][...]
            w_bot = wb_refs[3 * l + 1][...]
            bias = wb_refs[3 * l + 2][...]
            a_neg = inv(a)
            # Two MXU matmuls per layer (no lane-axis concat of [a | inv(a)]).
            # Casts are no-ops at the default mxu_dtype=f32; on v6e/v7x set
            # mxu_dtype=bf16 to use the native bf16 MXU (accumulate stays f32).
            z = (jnp.dot(a.astype(mxu_dtype), w_top.astype(mxu_dtype),
                         preferred_element_type=jnp.float32)
                 + jnp.dot(a_neg.astype(mxu_dtype), w_bot.astype(mxu_dtype),
                           preferred_element_type=jnp.float32)
                 + bias)
            a = act(z)             # next activation (lane-dense, padded cols ride along)
        o_ref[...] = a.astype(o_ref.dtype)
    return kernel


def pnn_forward(X, folded_layers, eta8, n_out, *, block_batch=None,
                block_cap=2048, mxu_dtype=jnp.float32):
    """Fused pNN forward: one pallas_call for all layers.

    folded_layers: list of (w_top, w_bot, bias); every layer's output columns
    are padded to a multiple of 128 lanes and the next layer's input rows are
    zero-padded to match.  Returns the (N, n_out) activations.
    """
    N, d0 = X.shape
    num_layers = len(folded_layers)
    n_pad = folded_layers[-1][0].shape[1]       # padded output width (x128)

    # ----- batch tiling -----
    if block_batch is None:
        n8 = _round_up(N, SUBLANE)
        if n8 <= 2 * SUBLANE:
            # tiny batch: single grid step on one TensorCore (no split overhead)
            block_batch = n8
        else:
            # >=2 grid steps so a v7x megacore can shard the (parallel) batch
            # axis across both TensorCores; capped so the (block_batch, n_pad)
            # f32 output tile double-buffered stays tiny vs v7x's 32 MiB
            # scoped-VMEM default (2048*128*4*2 = 2 MiB).
            block_batch = min(block_cap, _round_up(pl.cdiv(n8, 2), SUBLANE))
    block_batch = _round_up(block_batch, SUBLANE)

    N_pad = _round_up(N, block_batch)
    if N_pad != N:
        X = jnp.pad(X, ((0, N_pad - N), (0, 0)))     # row-pad; sliced off below
    grid = (N_pad // block_batch,)

    in_specs = [
        pl.BlockSpec(memory_space=pltpu.MemorySpace.SMEM),     # eta scalars
        pl.BlockSpec((block_batch, d0), lambda i: (i, 0)),     # activations
    ]
    operands = [eta8, X]

    flops = 0
    transcendentals = 0
    bytes_accessed = X.size * 4 + N_pad * n_pad * 4
    for w_top, w_bot, bias in folded_layers:
        # Grid-invariant weights/biases: constant index_map -> they stay
        # resident in VMEM across all grid steps (no per-step re-DMA).
        in_specs.append(pl.BlockSpec(w_top.shape, lambda i: (0, 0)))
        in_specs.append(pl.BlockSpec(w_bot.shape, lambda i: (0, 0)))
        in_specs.append(pl.BlockSpec(bias.shape, lambda i: (0, 0)))
        operands += [w_top, w_bot, bias]
        k, n = w_top.shape
        flops += 2 * 2 * N_pad * k * n              # two MXU matmuls per layer
        transcendentals += N_pad * (k + n)          # inv() + act() tanh per layer
        bytes_accessed += 4 * (w_top.size + w_bot.size + bias.size)

    # Single grid step (tiny batch): keep on one TensorCore; with a real batch
    # the grid axis tiles the rows and is "parallel" for megacore sharding.
    semantics = ("parallel",) if grid[0] > 1 else ("arbitrary",)

    out = pl.pallas_call(
        make_pnn_kernel(num_layers, mxu_dtype=mxu_dtype),
        out_shape=jax.ShapeDtypeStruct((N_pad, n_pad), jnp.float32),
        grid=grid,
        in_specs=in_specs,
        out_specs=pl.BlockSpec((block_batch, n_pad), lambda i: (i, 0)),
        compiler_params=pltpu.CompilerParams(dimension_semantics=semantics),
        cost_estimate=pl.CostEstimate(flops=flops,
                                      transcendentals=transcendentals,
                                      bytes_accessed=bytes_accessed),
    )(*operands)
    return out[:N, :n_out]


# ----------------------------------------------------------------------------
# Pure-JAX references (for verification)
# ----------------------------------------------------------------------------
def pnn_forward_ref(X, layers, eta_inv, eta_act):
    """Faithful mirror of the PyTorch forward (ones/zeros extension etc.)."""
    ei0, ei1, ei2, ei3 = [eta_inv[i] for i in range(4)]
    ea0, ea1, ea2, ea3 = [eta_act[i] for i in range(4)]
    a = X
    for wp, wn in layers:
        ones = jnp.ones((a.shape[0], 1), jnp.float32)
        zeros = jnp.zeros((a.shape[0], 1), jnp.float32)
        a_ext = jnp.concatenate([a, ones, zeros], axis=1)
        a_neg = -(ei0 + ei1 * jnp.tanh((a_ext - ei2) * ei3))
        a_neg = a_neg.at[:, -1].set(0.0)
        z = a_ext @ wp + a_neg @ wn
        a = ea0 + ea1 * jnp.tanh((z - ea2) * ea3)
    return a


def pnn_forward_folded_ref(X, folded_layers, eta8, n_out):
    """Same folded/split/padded formulation as the kernel, in plain JAX."""
    ei0, ei1, ei2, ei3, ea0, ea1, ea2, ea3 = [eta8[i] for i in range(8)]
    a = X
    for w_top, w_bot, bias in folded_layers:
        a_neg = -(ei0 + ei1 * jnp.tanh((a - ei2) * ei3))
        z = a @ w_top + a_neg @ w_bot + bias
        a = ea0 + ea1 * jnp.tanh((z - ea2) * ea3)
    return a[:, :n_out]


# ----------------------------------------------------------------------------
if __name__ == "__main__":
    args = Args()
    key = jax.random.PRNGKey(0)
    k_act, k_inv, k_x, k_t0, k_t1 = jax.random.split(key, 5)

    # deterministic synthetic "model packages"
    act_pkg = {
        "X_min": 0.1 * jnp.arange(1, 10, dtype=jnp.float32),
        "X_max": 0.1 * jnp.arange(1, 10, dtype=jnp.float32) + 1.0,
        "Y_min": jnp.array([-0.05, 0.5, 0.05, 1.0], jnp.float32),
        "Y_max": jnp.array([0.05, 1.5, 0.45, 5.0], jnp.float32),
        "est": init_mlp(k_act, [9, 16, 4]),
    }
    inv_pkg = {
        "X_min": 0.1 * jnp.arange(1, 11, dtype=jnp.float32),
        "X_max": 0.1 * jnp.arange(1, 11, dtype=jnp.float32) + 1.0,
        "Y_min": jnp.array([-0.05, 0.5, 0.05, 1.0], jnp.float32),
        "Y_max": jnp.array([0.05, 1.5, 0.45, 5.0], jnp.float32),
        "est": init_mlp(k_inv, [10, 16, 4]),
    }

    eta_act = tanh_rt_eta(args, act_pkg)    # (4,)
    eta_inv = inv_rt_eta(args, inv_pkg)     # (4,)
    eta8 = jnp.concatenate([eta_inv, eta_act]).astype(jnp.float32)  # (8,) -> SMEM

    # pNN topology and deterministic pLayer parameters
    topology = [4, 16, 3]
    batch = 8
    layer_keys = [k_t0, k_t1]
    raw_layers = []
    for i in range(len(topology) - 1):
        theta = init_theta(layer_keys[i], topology[i], topology[i + 1], args,
                           float(eta_act[2]))
        raw_layers.append(layer_weights(theta, args))

    # Fold the [a, 1, 0] extension into a bias; split top/bottom weight rows;
    # pad EVERY layer's output columns (and the next layer's input rows) so
    # all intermediate tiles are lane-dense and garbage lanes hit zero weights.
    folded = []
    prev_width = topology[0]
    for i, (wp, wn) in enumerate(raw_layers):
        n_out_l = wp.shape[1]
        pad_cols = _round_up(max(n_out_l, LANE), LANE)
        folded.append(fold_layer_split(wp, wn, eta_inv,
                                       pad_rows_to=prev_width,
                                       pad_cols_to=pad_cols))
        prev_width = pad_cols

    X = jax.random.normal(k_x, (batch, topology[0]), jnp.float32)

    # NOTE: if this forward is evaluated repeatedly (training / MC sweeps),
    # stack the independent inputs into one big batch before calling — the
    # wrapper then tiles rows over a parallel grid axis and the per-call
    # launch/DMA overhead is amortized.
    out = pnn_forward(X, folded, eta8, n_out=topology[-1])
    out = jax.block_until_ready(out)
    assert out.shape == (batch, topology[-1])

    # tight check: same folded/split formulation in plain JAX
    ref_folded = pnn_forward_folded_ref(X, folded, eta8, topology[-1])
    assert jnp.allclose(out, ref_folded, rtol=1e-4, atol=1e-4), "Pallas/JAX (folded) mismatch"

    # semantic check: faithful mirror of the PyTorch forward
    ref_exact = pnn_forward_ref(X, raw_layers, eta_inv, eta_act)
    assert jnp.allclose(out, ref_exact, rtol=2e-2, atol=2e-2), "Pallas/PyTorch-forward mismatch"

    print("KERNEL_OK")
</pallas_src>

<mosaic_0001>
module attributes {stable_mosaic.version = 11 : i64} {
  func.func @kernel(%arg0: i32, %arg1: memref<8xf32, #tpu.memory_space<smem>>, %arg2: memref<8x4xf32, #tpu.memory_space<vmem>>, %arg3: memref<4x128xf32, #tpu.memory_space<vmem>>, %arg4: memref<4x128xf32, #tpu.memory_space<vmem>>, %arg5: memref<1x128xf32, #tpu.memory_space<vmem>>, %arg6: memref<128x128xf32, #tpu.memory_space<vmem>>, %arg7: memref<128x128xf32, #tpu.memory_space<vmem>>, %arg8: memref<1x128xf32, #tpu.memory_space<vmem>>, %arg9: memref<8x128xf32, #tpu.memory_space<vmem>>) attributes {dimension_semantics = [#tpu.dimension_semantics<arbitrary>], iteration_bounds = array<i64: 1>, scalar_prefetch = 0 : i64, scratch_operands = 0 : i64, tpu.core_type = #tpu.core_type<tc>, window_params = [{transform_indices = @transform_0, window_bounds = array<i64: 8>}, {transform_indices = @transform_1, window_bounds = array<i64: 8, 4>}, {pipeline_mode = #tpu.pipeline_mode<synchronous>, transform_indices = @transform_2, window_bounds = array<i64: 4, 128>}, {pipeline_mode = #tpu.pipeline_mode<synchronous>, transform_indices = @transform_3, window_bounds = array<i64: 4, 128>}, {pipeline_mode = #tpu.pipeline_mode<synchronous>, transform_indices = @transform_4, window_bounds = array<i64: 1, 128>}, {pipeline_mode = #tpu.pipeline_mode<synchronous>, transform_indices = @transform_5, window_bounds = array<i64: 128, 128>}, {pipeline_mode = #tpu.pipeline_mode<synchronous>, transform_indices = @transform_6, window_bounds = array<i64: 128, 128>}, {pipeline_mode = #tpu.pipeline_mode<synchronous>, transform_indices = @transform_7, window_bounds = array<i64: 1, 128>}, {transform_indices = @transform_8, window_bounds = array<i64: 8, 128>}]} {
    %c0 = arith.constant 0 : index
    %0 = memref.load %arg1[%c0] : memref<8xf32, #tpu.memory_space<smem>>
    %c1 = arith.constant 1 : index
    %1 = memref.load %arg1[%c1] : memref<8xf32, #tpu.memory_space<smem>>
    %c2 = arith.constant 2 : index
    %2 = memref.load %arg1[%c2] : memref<8xf32, #tpu.memory_space<smem>>
    %c3 = arith.constant 3 : index
    %3 = memref.load %arg1[%c3] : memref<8xf32, #tpu.memory_space<smem>>
    %c4 = arith.constant 4 : index
    %4 = memref.load %arg1[%c4] : memref<8xf32, #tpu.memory_space<smem>>
    %c5 = arith.constant 5 : index
    %5 = memref.load %arg1[%c5] : memref<8xf32, #tpu.memory_space<smem>>
    %c6 = arith.constant 6 : index
    %6 = memref.load %arg1[%c6] : memref<8xf32, #tpu.memory_space<smem>>
    %c7 = arith.constant 7 : index
    %7 = memref.load %arg1[%c7] : memref<8xf32, #tpu.memory_space<smem>>
    %c0_0 = arith.constant 0 : index
    %c0_1 = arith.constant 0 : index
    %8 = vector.load %arg2[%c0_0, %c0_1] : memref<8x4xf32, #tpu.memory_space<vmem>>, vector<8x4xf32>
    %c0_2 = arith.constant 0 : index
    %c0_3 = arith.constant 0 : index
    %9 = vector.load %arg3[%c0_2, %c0_3] : memref<4x128xf32, #tpu.memory_space<vmem>>, vector<4x128xf32>
    %c0_4 = arith.constant 0 : index
    %c0_5 = arith.constant 0 : index
    %10 = vector.load %arg4[%c0_4, %c0_5] : memref<4x128xf32, #tpu.memory_space<vmem>>, vector<4x128xf32>
    %c0_6 = arith.constant 0 : index
    %c0_7 = arith.constant 0 : index
    %11 = vector.load %arg5[%c0_6, %c0_7] : memref<1x128xf32, #tpu.memory_space<vmem>>, vector<1x128xf32>
    %12 = vector.broadcast %2 : f32 to vector<8x4xf32>
    %13 = arith.subf %8, %12 : vector<8x4xf32>
    %14 = vector.broadcast %3 : f32 to vector<8x4xf32>
    %15 = arith.mulf %13, %14 : vector<8x4xf32>
    %16 = math.tanh %15 : vector<8x4xf32>
    %17 = vector.broadcast %1 : f32 to vector<8x4xf32>
    %18 = arith.mulf %17, %16 : vector<8x4xf32>
    %19 = vector.broadcast %0 : f32 to vector<8x4xf32>
    %20 = arith.addf %19, %18 : vector<8x4xf32>
    %cst = arith.constant 0.000000e+00 : f32
    %21 = vector.broadcast %cst : f32 to vector<8x4xf32>
    %22 = arith.subf %21, %20 : vector<8x4xf32>
    %cst_8 = arith.constant dense<0.000000e+00> : vector<8x128xf32>
    %23 = tpu.matmul %8, %9, %cst_8 {dimension_numbers = #tpu.dot_dimension_numbers<[1], [0], [0], [1], [0, 0, 1, 1], [], []>} : vector<8x4xf32>, vector<4x128xf32>, vector<8x128xf32> -> vector<8x128xf32>
    %cst_9 = arith.constant dense<0.000000e+00> : vector<8x128xf32>
    %24 = tpu.matmul %22, %10, %cst_9 {dimension_numbers = #tpu.dot_dimension_numbers<[1], [0], [0], [1], [0, 0, 1, 1], [], []>} : vector<8x4xf32>, vector<4x128xf32>, vector<8x128xf32> -> vector<8x128xf32>
    %25 = arith.addf %23, %24 : vector<8x128xf32>
    %26 = vector.broadcast %11 : vector<1x128xf32> to vector<8x128xf32>
    %27 = arith.addf %25, %26 : vector<8x128xf32>
    %28 = vector.broadcast %6 : f32 to vector<8x128xf32>
    %29 = arith.subf %27, %28 : vector<8x128xf32>
    %30 = vector.broadcast %7 : f32 to vector<8x128xf32>
    %31 = arith.mulf %29, %30 : vector<8x128xf32>
    %32 = math.tanh %31 : vector<8x128xf32>
    %33 = vector.broadcast %5 : f32 to vector<8x128xf32>
    %34 = arith.mulf %33, %32 : vector<8x128xf32>
    %35 = vector.broadcast %4 : f32 to vector<8x128xf32>
    %36 = arith.addf %35, %34 : vector<8x128xf32>
    %c0_10 = arith.constant 0 : index
    %c0_11 = arith.constant 0 : index
    %37 = vector.load %arg6[%c0_10, %c0_11] : memref<128x128xf32, #tpu.memory_space<vmem>>, vector<128x128xf32>
    %c0_12 = arith.constant 0 : index
    %c0_13 = arith.constant 0 : index
    %38 = vector.load %arg7[%c0_12, %c0_13] : memref<128x128xf32, #tpu.memory_space<vmem>>, vector<128x128xf32>
    %c0_14 = arith.constant 0 : index
    %c0_15 = arith.constant 0 : index
    %39 = vector.load %arg8[%c0_14, %c0_15] : memref<1x128xf32, #tpu.memory_space<vmem>>, vector<1x128xf32>
    %40 = vector.broadcast %2 : f32 to vector<8x128xf32>
    %41 = arith.subf %36, %40 : vector<8x128xf32>
    %42 = vector.broadcast %3 : f32 to vector<8x128xf32>
    %43 = arith.mulf %41, %42 : vector<8x128xf32>
    %44 = math.tanh %43 : vector<8x128xf32>
    %45 = vector.broadcast %1 : f32 to vector<8x128xf32>
    %46 = arith.mulf %45, %44 : vector<8x128xf32>
    %47 = vector.broadcast %0 : f32 to vector<8x128xf32>
    %48 = arith.addf %47, %46 : vector<8x128xf32>
    %cst_16 = arith.constant 0.000000e+00 : f32
    %49 = vector.broadcast %cst_16 : f32 to vector<8x128xf32>
    %50 = arith.subf %49, %48 : vector<8x128xf32>
    %cst_17 = arith.constant dense<0.000000e+00> : vector<8x128xf32>
    %51 = tpu.matmul %36, %37, %cst_17 {dimension_numbers = #tpu.dot_dimension_numbers<[1], [0], [0], [1], [0, 0, 1, 1], [], []>} : vector<8x128xf32>, vector<128x128xf32>, vector<8x128xf32> -> vector<8x128xf32>
    %cst_18 = arith.constant dense<0.000000e+00> : vector<8x128xf32>
    %52 = tpu.matmul %50, %38, %cst_18 {dimension_numbers = #tpu.dot_dimension_numbers<[1], [0], [0], [1], [0, 0, 1, 1], [], []>} : vector<8x128xf32>, vector<128x128xf32>, vector<8x128xf32> -> vector<8x128xf32>
    %53 = arith.addf %51, %52 : vector<8x128xf32>
    %54 = vector.broadcast %39 : vector<1x128xf32> to vector<8x128xf32>
    %55 = arith.addf %53, %54 : vector<8x128xf32>
    %56 = vector.broadcast %6 : f32 to vector<8x128xf32>
    %57 = arith.subf %55, %56 : vector<8x128xf32>
    %58 = vector.broadcast %7 : f32 to vector<8x128xf32>
    %59 = arith.mulf %57, %58 : vector<8x128xf32>
    %60 = math.tanh %59 : vector<8x128xf32>
    %61 = vector.broadcast %5 : f32 to vector<8x128xf32>
    %62 = arith.mulf %61, %60 : vector<8x128xf32>
    %63 = vector.broadcast %4 : f32 to vector<8x128xf32>
    %64 = arith.addf %63, %62 : vector<8x128xf32>
    %c0_19 = arith.constant 0 : index
    %c0_20 = arith.constant 0 : index
    %65 = vector.load %arg9[%c0_19, %c0_20] : memref<8x128xf32, #tpu.memory_space<vmem>>, vector<8x128xf32>
    tpu.vector_store %arg9[%c0_19, %c0_20], %64 {strides = array<i32>} : memref<8x128xf32, #tpu.memory_space<vmem>>, vector<8x128xf32>,
    return
  }
  func.func @transform_0(%arg0: i32) -> i32 {
    %c0_i32 = arith.constant 0 : i32
    %c0_i32_0 = arith.constant 0 : i32
    return %c0_i32 : i32
  }
  func.func @transform_1(%arg0: i32) -> (i32, i32) {
    %c0_i32 = arith.constant 0 : i32
    %c0_i32_0 = arith.constant 0 : i32
    return %arg0, %c0_i32 : i32, i32
  }
  func.func @transform_2(%arg0: i32) -> (i32, i32) {
    %c0_i32 = arith.constant 0 : i32
    %c0_i32_0 = arith.constant 0 : i32
    %c0_i32_1 = arith.constant 0 : i32
    return %c0_i32, %c0_i32_0 : i32, i32
  }
  func.func @transform_3(%arg0: i32) -> (i32, i32) {
    %c0_i32 = arith.constant 0 : i32
    %c0_i32_0 = arith.constant 0 : i32
    %c0_i32_1 = arith.constant 0 : i32
    return %c0_i32, %c0_i32_0 : i32, i32
  }
  func.func @transform_4(%arg0: i32) -> (i32, i32) {
    %c0_i32 = arith.constant 0 : i32
    %c0_i32_0 = arith.constant 0 : i32
    %c0_i32_1 = arith.constant 0 : i32
    return %c0_i32, %c0_i32_0 : i32, i32
  }
  func.func @transform_5(%arg0: i32) -> (i32, i32) {
    %c0_i32 = arith.constant 0 : i32
    %c0_i32_0 = arith.constant 0 : i32
    %c0_i32_1 = arith.constant 0 : i32
    return %c0_i32, %c0_i32_0 : i32, i32
  }
  func.func @transform_6(%arg0: i32) -> (i32, i32) {
    %c0_i32 = arith.constant 0 : i32
    %c0_i32_0 = arith.constant 0 : i32
    %c0_i32_1 = arith.constant 0 : i32
    return %c0_i32, %c0_i32_0 : i32, i32
  }
  func.func @transform_7(%arg0: i32) -> (i32, i32) {
    %c0_i32 = arith.constant 0 : i32
    %c0_i32_0 = arith.constant 0 : i32
    %c0_i32_1 = arith.constant 0 : i32
    return %c0_i32, %c0_i32_0 : i32, i32
  }
  func.func @transform_8(%arg0: i32) -> (i32, i32) {
    %c0_i32 = arith.constant 0 : i32
    %c0_i32_0 = arith.constant 0 : i32
    return %arg0, %c0_i32 : i32, i32
  }
}

</mosaic_0001>

<bundles_post_ra>
// kernel: tpu_custom_call.1
= control target key start
LH: loop header
LB: loop body
LE: loop exit
PB: predicated region body
PF: predicated region fallthrough
CT: control target
= control target key end

     0   :  { %13 = vsyncpa [#allocation5], 0  ;;  %s918_s0 = inlined_call_operand.vmem [shape: f32[8], index: 0, kind: input, shape index: {}]   ;;  %s919_s1 = inlined_call_operand.vmem [shape: f32[8,4], index: 1, kind: input, shape index: {}]   ;;  %s920_s2 = inlined_call_operand.vmem [shape: f32[4,128], index: 2, kind: input, shape index: {}]   ;;  %s921_s3 = inlined_call_operand.vmem [shape: f32[4,128], index: 3, kind: input, shape index: {}]   ;;  %s922_s4 = inlined_call_operand.vmem [shape: f32[1,128], index: 4, kind: input, shape index: {}]   ;;  %s923_s5 = inlined_call_operand.hbm [shape: f32[128,128], index: 5, kind: input, shape index: {}]   ;;  %s924_s6 = inlined_call_operand.hbm [shape: f32[128,128], index: 6, kind: input, shape index: {}]   ;;  %s925_s7 = inlined_call_operand.vmem [shape: f32[1,128], index: 7, kind: input, shape index: {}]   ;;  %s926_s8 = inlined_call_operand.hbm [shape: f32[8,128], index: 8, kind: output, shape index: {}]  }
   0x1   :  { %14 = vsyncpa [#allocation3], 0 }
   0x2   :  { %15 = vsyncpa [#allocation8], 0 }
   0x3   :  { %16 = vsyncpa [#allocation4], 0  ;;  %s23_s29 = sshll.u32 %s918_s0, 4  ;;  %s24_s29 = int_to_ptr.vmem [resolvable:$true] %s23_s29 }
   0x4   :  { %s668_s30 = scalar_lea.vmem %s24_s29, 16  ;;  %p673_p1 = scmp.lt.s32.totalorder %s24_s29, %s24_s29 }
   0x5   :  { %p669_p0 = scmp.ne.s32.totalorder %s24_s29, %s668_s30  ;;  %p674_p2 = scmp.lt.s32.totalorder %s668_s30, %s668_s30 }
   0x7   :  { %p675_p3 = por %p674_p2, %p673_p1 }
   0x9   :  { %p676_p4 = pnand %p675_p3, %p669_p0 }
   0xb   :  { %679 = shalt.err (!%p676_p4)
}
   0xc   :  { %s754_s9 = smov [#allocation2]   ;;  %s755_s10 = smov [#allocation6]  }
   0xd   :  { %26 = dma.vmem_to_smem %s24_s29, 16, %s754_s9, [#allocation5]  }
   0xe   :  { %s40_s11 = sshll.u32 %s755_s10, 4  ;;  %s680_s14 = scalar_lea.hbm %s923_s5, 2048  ;;  %s41_s11 = int_to_ptr.vmem [resolvable:$true] %s40_s11 }
   0xf   :  { %p681_p5 = scmp.ne.s32.totalorder %s923_s5, %s680_s14  ;;  %p684_p6 = scmp.lt.u32.totalorder %s680_s14, %s923_s5 }
  0x11   :  { %p686_p7 = pnand %p684_p6, %p681_p5 }
  0x13   :  { %689 = shalt.err (!%p686_p7)
}
  0x14   :  { %s690_s18 = scalar_lea.vmem %s41_s11, 2048  ;;  %p695_p9 = scmp.lt.s32.totalorder %s41_s11, %s41_s11 }
  0x15   :  { %p691_p8 = scmp.ne.s32.totalorder %s41_s11, %s690_s18  ;;  %p696_p10 = scmp.lt.s32.totalorder %s690_s18, %s690_s18 }
  0x17   :  { %p697_p11 = por %p696_p10, %p695_p9 }
  0x19   :  { %p698_p12 = pnand %p697_p11, %p691_p8 }
  0x1b   :  { %701 = shalt.err (!%p698_p12)
}
  0x1c   :  { %s756_s19 = smov 128   ;;  %s757_s20 = smov 8  }
  0x1d   :  { %46 = dma.hbm_to_vmem [thread:$0]  %s923_s5, 2048, %s41_s11, [#allocation3], %s756_s19, %s756_s19, %s757_s20  }
  0x1e   :  { %s758_s23 = smov [#allocation7]   ;;  %s702_s27 = scalar_lea.hbm %s924_s6, 2048 }
  0x1f   :  { %s52_s24 = sshll.u32 %s758_s23, 4  ;;  %p703_p13 = scmp.ne.s32.totalorder %s924_s6, %s702_s27  ;;  %s53_s24 = int_to_ptr.vmem [resolvable:$true] %s52_s24 }
  0x20   :  { %p706_p0 = scmp.lt.u32.totalorder %s702_s27, %s924_s6 }
  0x22   :  { %p708_p1 = pnand %p706_p0, %p703_p13 }
  0x24   :  { %711 = shalt.err (!%p708_p1)
}
  0x25   :  { %s712_s10 = scalar_lea.vmem %s53_s24, 2048  ;;  %p717_p3 = scmp.lt.s32.totalorder %s53_s24, %s53_s24 }
  0x26   :  { %p713_p2 = scmp.ne.s32.totalorder %s53_s24, %s712_s10  ;;  %p718_p4 = scmp.lt.s32.totalorder %s712_s10, %s712_s10 }
  0x28   :  { %p719_p5 = por %p718_p4, %p717_p3 }
  0x2a   :  { %p720_p6 = pnand %p719_p5, %p713_p2 }
  0x2c   :  { %723 = shalt.err (!%p720_p6)
}
  0x2d   :  { %58 = dma.hbm_to_vmem [thread:$0]  %s924_s6, 2048, %s53_s24, [#allocation8], %s756_s19, %s756_s19, %s757_s20  }
  0x2e   :  { %746 = dma.done.wait [#allocation5], 16  }
  0x2f   :  { %747 = vsyncadd [#allocation5], 4294967280 }
  0x30   :  { %748 = dma.done.wait [#allocation3], 2048  }
  0x31   :  { %749 = vsyncadd [#allocation3], 4294965248 }
  0x32   :  { %750 = dma.done.wait [#allocation8], 2048  }
  0x33   :  { %751 = vsyncadd [#allocation8], 4294965248 }
  0x34   :  { %70 = sfence }
  0x35   :  { %v80_v0 = vld [vmem:[%s920_s2] sm:$0xf]  ;;  %vm97_vm0 = vcmask 1043456   ;;  %v759_v1 = vmov 0.0   ;;  %s841_s6 = sld [smem:[#allocation2 + $0x2]]  ;;  %s843_s16 = sld [smem:[#allocation2 + $0x3]] }
  0x36   :  { %528 = vmatprep.subr.mxu1 %v759_v1  ;;  %523 = vmatprep.subr.mxu0 %v759_v1  ;;  %v81_v2 = vld [vmem:[%s921_s3] sm:$0xf]  ;;  %vm760_vm1 = vmmov 0   ;;  %vm93_vm2 = vcmask 31744   ;;  %v264_v5 = vld [vmem:[#allocation6 + $0x8] sm:$0xff]  ;;  %v265_v6 = vld [vmem:[#allocation6 + $0x10] sm:$0xff] }
  0x37   :  { %529 = vmatpush3.msk.msra.mxu1 %vm97_vm0, %v80_v0  ;;  %530 = vmatprep.mubr.msk.f32.mxu1 %vm760_vm1, %v759_v1  ;;  %v79_v3 = vld [vmem:[%s919_s1] sm:$0xff]  ;;  %v761_v7 = vmov 0.0|0.0   ;;  %v266_v9 = vld [vmem:[#allocation6 + $0x18] sm:$0xff]  ;;  %s862_s1 = sld [smem:[#allocation2 + $0x1]]  ;;  %s864_s2 = sld [smem:[#allocation2]]  ;;  %v268_v22 = vld [vmem:[#allocation6 + $0x28] sm:$0xff] }
  0x38   :  { %524 = vmatpush3.msk.msra.mxu0 %vm97_vm0, %v81_v2  ;;  %525 = vmatprep.mubr.msk.f32.mxu0 %vm760_vm1, %v759_v1  ;;  %v263_v4 = vld [vmem:[#allocation6] sm:$0xff]  ;;  %v631_v10 = vpack.c.bf16 %v266_v9, %v265_v6  ;;  %v269_v24 = vld [vmem:[#allocation6 + $0x30] sm:$0xff]  ;;  %v270_v25 = vld [vmem:[#allocation6 + $0x38] sm:$0xff]  ;;  %s886_s3 = sld [smem:[#allocation2 + $0x6]]  ;;  %s888_s18 = sld [smem:[#allocation2 + $0x7]] }
  0x39   :  { %531 = vmatmul.mubr.msk.f32.vlgmr.msra.gmra.mrb[0].mxu1 %vm93_vm2, %v79_v3  ;;  %627 = vmatprep.subr.bf16.mxu1 %v761_v7  ;;  %v628_v8 = vpack.c.bf16 %v264_v5, %v263_v4  ;;  %v267_v21 = vld [vmem:[#allocation6 + $0x20] sm:$0xff]  ;;  %v637_v26 = vpack.c.bf16 %v270_v25, %v269_v24  ;;  %v272_v28 = vld [vmem:[#allocation6 + $0x48] sm:$0xff]  ;;  %v273_v30 = vld [vmem:[#allocation6 + $0x50] sm:$0xff]  ;;  %s476_s21 = sld [smem:[#allocation2 + $0x5]]  ;;  %s475_s22 = sld [smem:[#allocation2 + $0x4]] }
  0x3a   :  { %603 = vmatprep.subr.bf16.mxu0 %v761_v7  ;;  %600 = vmatprep.mubr.msk.f32.mxu1 %vm760_vm1, %v759_v1  ;;  %v634_v23 = vpack.c.bf16 %v268_v22, %v267_v21  ;;  %v271_v27 = vld [vmem:[#allocation6 + $0x40] sm:$0xff]  ;;  %v274_v31 = vld [vmem:[#allocation6 + $0x58] sm:$0xff]  ;;  %v280_v34 = vld [vmem:[#allocation7 + $0x8] sm:$0xff]  ;;  %s762_s24 = smov [#allocation9]  }
  0x3b   :  { %629 = vmatpush3.bf16.msra.mxu1 %v628_v8  ;;  %v83_v11 = vstv %s841_s6  ;;  %v85_v12 = vstv %s843_s16  ;;  %v640_v29 = vpack.c.bf16 %v272_v28, %v271_v27  ;;  %v279_v32 = vld [vmem:[#allocation7] sm:$0xff]  ;;  %v643_v33 = vpack.c.bf16 %v274_v31, %v273_v30  ;;  %v276_v36 = vld [vmem:[#allocation6 + $0x68] sm:$0xff]  ;;  %v281_v38 = vld [vmem:[#allocation7 + $0x10] sm:$0xff]  ;;  %s461_s25 = sshll.u32 %s762_s24, 4  ;;  %s462_s25 = int_to_ptr.vmem [resolvable:$true] %s461_s25 }
  0x3c   :  { %630 = vmatprep.subr.bf16.mxu1 %v761_v7  ;;  %v84_v13 = vsub.f32 %v79_v3, %v83_v11  ;;  %v275_v35 = vld [vmem:[#allocation6 + $0x60] sm:$0xff]  ;;  %v604_v37 = vpack.c.bf16 %v280_v34, %v279_v32  ;;  %v282_v39 = vld [vmem:[#allocation7 + $0x18] sm:$0xff]  ;;  %v277_v42 = vld [vmem:[#allocation6 + $0x70] sm:$0xff]  ;;  %s724_s26 = scalar_lea.vmem %s462_s25, 128  ;;  %p729_p8 = scmp.lt.s32.totalorder %s462_s25, %s462_s25 }
  0x3d   :  { %v88_v15 = vstv %s862_s1  ;;  %v90_v17 = vstv %s864_s2  ;;  %v646_v40 = vpack.c.bf16 %v276_v36, %v275_v35  ;;  %v607_v41 = vpack.c.bf16 %v282_v39, %v281_v38  ;;  %v278_v43 = vld [vmem:[#allocation6 + $0x78] sm:$0xff]  ;;  %v283_v44 = vld [vmem:[#allocation7 + $0x20] sm:$0xff]  ;;  %v284_v45 = vld [vmem:[#allocation7 + $0x28] sm:$0xff]  ;;  %p725_p7 = scmp.ne.s32.totalorder %s462_s25, %s724_s26  ;;  %p730_p9 = scmp.lt.s32.totalorder %s724_s26, %s724_s26 }
  0x3e   :  { %v86_v14 = vmul.f32 %v85_v12, %v84_v13  ;;  %v649_v46 = vpack.c.bf16 %v278_v43, %v277_v42  ;;  %v610_v47 = vpack.c.bf16 %v284_v45, %v283_v44  ;;  %v285_v48 = vld [vmem:[#allocation7 + $0x30] sm:$0xff]  ;;  %v286_v49 = vld [vmem:[#allocation7 + $0x38] sm:$0xff]  ;;  %v287_v51 = vld [vmem:[#allocation7 + $0x40] sm:$0xff]  ;;  %v254_v5 = vstv %s886_s3 }
  0x3f   :  { %632 = vmatpush3.bf16.msra.mxu1 %v631_v10  ;;  %v613_v50 = vpack.c.bf16 %v286_v49, %v285_v48  ;;  %v288_v52 = vld [vmem:[#allocation7 + $0x48] sm:$0xff]  ;;  %v289_v54 = vld [vmem:[#allocation7 + $0x50] sm:$0xff]  ;;  %v290_v55 = vld [vmem:[#allocation7 + $0x58] sm:$0xff]  ;;  %v259_v10 = vstv %s476_s21  ;;  %p731_p10 = por %p730_p9, %p729_p8 }
  0x40   :  { %633 = vmatprep.subr.bf16.mxu1 %v761_v7  ;;  %660 = vtanh.f32 %v86_v14  ;;  %v616_v53 = vpack.c.bf16 %v288_v52, %v287_v51  ;;  %v619_v56 = vpack.c.bf16 %v290_v55, %v289_v54  ;;  %v291_v57 = vld [vmem:[#allocation7 + $0x60] sm:$0xff]  ;;  %v292_v58 = vld [vmem:[#allocation7 + $0x68] sm:$0xff]  ;;  %v293_v60 = vld [vmem:[#allocation7 + $0x70] sm:$0xff]  ;;  %v261_v14 = vstv %s475_s22 }
  0x41   :  { %v622_v59 = vpack.c.bf16 %v292_v58, %v291_v57  ;;  %v294_v61 = vld [vmem:[#allocation7 + $0x78] sm:$0xff]  ;;  %v484_v27 = vld [vmem:[%s925_s7] ss:$0 sm:$0xff]  ;;  %p732_p11 = pnand %p731_p10, %p725_p7 }
  0x42   :  { %v625_v62 = vpack.c.bf16 %v294_v61, %v293_v60 }
  0x43   :  { %635 = vmatpush3.bf16.msra.mxu1 %v634_v23 }
  0x44   :  { %636 = vmatprep.subr.bf16.mxu1 %v761_v7 }
  0x47   :  { %638 = vmatpush3.bf16.msra.mxu1 %v637_v26 }
  0x48   :  { %639 = vmatprep.subr.bf16.mxu1 %v761_v7 }
  0x4a   :  { %v661_v16 = vpop.eup %660 }
  0x4b   :  { %v89_v18 = vmul.f32 %v661_v16, %v88_v15  ;;  %641 = vmatpush3.bf16.msra.mxu1 %v640_v29 }
  0x4c   :  { %642 = vmatprep.subr.bf16.mxu1 %v761_v7 }
  0x4d   :  { %v91_v19 = vadd.f32 %v90_v17, %v89_v18 }
  0x4f   :  { %v92_v20 = vsub.f32 0.0, %v91_v19  ;;  %644 = vmatpush3.bf16.msra.mxu1 %v643_v33 }
  0x50   :  { %645 = vmatprep.subr.bf16.mxu1 %v761_v7 }
  0x51   :  { %526 = vmatmul.mubr.msk.f32.vlgmr.msra.gmra.mrb[0].mxu0 %vm93_vm2, %v92_v20 }
  0x52   :  { %565 = vmatprep.mubr.msk.f32.mxu0 %vm760_vm1, %v759_v1  ;;  %605 = vmatpush3.bf16.msra.mxu0 %v604_v37  ;;  %v483_v1 = vld [vmem:[%s922_s4] ss:$0 sm:$0xff] }
  0x53   :  { %606 = vmatprep.subr.bf16.mxu0 %v761_v7  ;;  %647 = vmatpush3.bf16.msra.mxu1 %v646_v40 }
  0x54   :  { %648 = vmatprep.subr.bf16.mxu1 %v761_v7 }
  0x56   :  { %608 = vmatpush3.bf16.msra.mxu0 %v607_v41 }
  0x57   :  { %609 = vmatprep.subr.bf16.mxu0 %v761_v7  ;;  %650 = vmatpush3.bf16.msra.mxu1 %v649_v46 }
  0x5a   :  { %611 = vmatpush3.bf16.msra.mxu0 %v610_v47 }
  0x5b   :  { %612 = vmatprep.subr.bf16.mxu0 %v761_v7 }
  0x5e   :  { %614 = vmatpush3.bf16.msra.mxu0 %v613_v50 }
  0x5f   :  { %615 = vmatprep.subr.bf16.mxu0 %v761_v7 }
  0x62   :  { %617 = vmatpush3.bf16.msra.mxu0 %v616_v53 }
  0x63   :  { %618 = vmatprep.subr.bf16.mxu0 %v761_v7 }
  0x66   :  { %620 = vmatpush3.bf16.msra.mxu0 %v619_v56 }
  0x67   :  { %621 = vmatprep.subr.bf16.mxu0 %v761_v7 }
  0x6a   :  { %623 = vmatpush3.bf16.msra.mxu0 %v622_v59 }
  0x6b   :  { %624 = vmatprep.subr.bf16.mxu0 %v761_v7  ;;  %v256_v7 = vstv %s888_s18 }
  0x6e   :  { %626 = vmatpush3.bf16.msra.mxu0 %v625_v62 }
 0x10c   :  { %v243_v63 = vpop.f32.mrb[0].mxu1 }
 0x10d   :  { %v532_v0 = vpop.f32.mrb[1].mxu1 }
 0x124   :  { %v167_v2 = vpop.f32.mrb[0].mxu0 }
 0x125   :  { %v244_v3 = vadd.f32 %v243_v63, %v167_v2  ;;  %v527_v4 = vpop.f32.mrb[1].mxu0 }
 0x127   :  { %v253_v6 = vadd.f32 %v483_v1, %v244_v3 }
 0x129   :  { %v255_v8 = vsub.f32 %v253_v6, %v254_v5 }
 0x12b   :  { %v257_v9 = vmul.f32 %v256_v7, %v255_v8 }
 0x12d   :  { %662 = vtanh.f32 %v257_v9 }
 0x137   :  { %v663_v13 = vpop.eup %662 }
 0x138   :  { %v260_v16 = vmul.f32 %v663_v13, %v259_v10 }
 0x13a   :  { %v262_v18 = vadd.f32 %v261_v14, %v260_v16 }
 0x13c   :  { %v296_v19 = vsub.f32 %v262_v18, %v83_v11  ;;  %601 = vmatmul.mubr.f32.vlgmr.msra.gmra.mrb[2].mxu1 %v262_v18 }
 0x13e   :  { %v297_v20 = vmul.f32 %v296_v19, %v85_v12 }
 0x140   :  { %664 = vtanh.f32 %v297_v20 }
 0x14a   :  { %v665_v21 = vpop.eup %664 }
 0x14b   :  { %v299_v22 = vmul.f32 %v665_v21, %v88_v15 }
 0x14d   :  { %v300_v23 = vadd.f32 %v299_v22, %v90_v17 }
 0x14f   :  { %v301_v24 = vsub.f32 0.0, %v300_v23 }
 0x151   :  { %566 = vmatmul.mubr.f32.vlgmr.msra.gmra.mrb[2].mxu0 %v301_v24 }
 0x20f   :  { %v438_v25 = vpop.f32.mrb[2].mxu1 }
 0x210   :  { %v602_v26 = vpop.f32.mrb[3].mxu1 }
 0x224   :  { %v368_v28 = vpop.f32.mrb[2].mxu0 }
 0x225   :  { %v439_v29 = vadd.f32 %v438_v25, %v368_v28  ;;  %v567_v11 = vpop.f32.mrb[3].mxu0 }
 0x227   :  { %v448_v30 = vadd.f32 %v484_v27, %v439_v29 }
 0x229   :  { %v449_v31 = vsub.f32 %v448_v30, %v254_v5 }
 0x22b   :  { %v450_v12 = vmul.f32 %v449_v31, %v256_v7 }
 0x22d   :  { %666 = vtanh.f32 %v450_v12 }
 0x237   :  { %v667_v32 = vpop.eup %666 }
 0x238   :  { %v452_v15 = vmul.f32 %v667_v32, %v259_v10 }
 0x23a   :  { %v453_v17 = vadd.f32 %v452_v15, %v261_v14 }
 0x23c   :  { %454 = vst [vmem:[#allocation9] sm:$0xff] %v453_v17 }
 0x23d   :  { %735 = shalt.err (!%p732_p11)
}
 0x23e   :  { %s736_s28 = scalar_lea.hbm %s926_s8, 128 }
 0x23f   :  { %p737_p12 = scmp.ne.s32.totalorder %s926_s8, %s736_s28  ;;  %p740_p13 = scmp.lt.u32.totalorder %s736_s28, %s926_s8 }
 0x241   :  { %p742_p0 = pnand %p740_p13, %p737_p12 }
 0x243   :  { %745 = shalt.err (!%p742_p0)
}
 0x244   :  { %464 = dma.vmem_to_hbm [thread:$0]  %s462_s25, 128, %s926_s8, [#allocation4]  }
 0x245   :  { %752 = dma.done.wait [#allocation4], 128  }
 0x246   :  { %753 = vsyncadd [#allocation4], 4294967168 }
 0x247   :  { %468 = vsyncpa [#allocation3], 1 }
 0x248   :  { %469 = vsyncpa [#allocation8], 1 }
 0x249   :  { %470 = vsyncpa [#allocation4], 1 }
 0x24a   :  { %471 = vsyncpa [#allocation5], 1 }

</bundles_post_ra>
